<compile_context>
chip_gen: v7x
topology: tpu7x:2x2x1
jax: 0.10.0
libtpu: 0.0.40
codegen_flags: <defaults>
</compile_context>

<pallas_src>
import jax
import jax.numpy as jnp
from jax.experimental import pallas as pl
from jax.experimental.pallas import tpu as pltpu

STATE_DIM = 32      # state_dim
H1 = 256            # first encoder hidden
H2 = 128            # encoder output width
DEFAULT_TB = 1024   # max batch tile (sweep 512/1024/2048 if desired)


def _round_up(x, m):
    return ((x + m - 1) // m) * m


def _choose_tile(B, tb):
    """Batch tile: single block for small B, >=2 blocks for B>256 (v7x megacore),
    capped at tb. Always a multiple of 8 (sublane)."""
    if B <= 256:
        natural = _round_up(B, 8)
    else:
        natural = max(128, _round_up(pl.cdiv(B, 2), 8))
    return min(_round_up(tb, 8), natural)


def encoder_kernel(x_ref, w1_ref, b1_ref, w2_ref, b2_ref, o_ref):
    # Fused 2-layer MLP on the MXU: relu(relu(x@W1 + b1)@W2 + b2)
    # x arrives f32, cast to bf16 in-kernel; both dots accumulate in f32;
    # biases + ReLU stay f32 (v5e VPU has no bf16 path).
    x = x_ref[...].astype(jnp.bfloat16)
    h = jnp.dot(x, w1_ref[...], preferred_element_type=jnp.float32)
    h = jnp.maximum(h + b1_ref[...], 0.0)
    y = jnp.dot(h.astype(jnp.bfloat16), w2_ref[...],
                preferred_element_type=jnp.float32)
    y = jnp.maximum(y + b2_ref[...], 0.0)
    o_ref[...] = y.astype(o_ref.dtype)


def hybrid_actor_forward(x, w1, b1, w2, b2, *, tb=DEFAULT_TB,
                         out_dtype=jnp.bfloat16):
    """x: (B, state_dim) f32. w1: (state_dim, 256), w2: (256, 128) -- ideally already
    bf16 (see prepare_params); b1: (1,256), b2: (1,128) f32. Returns (B, 128)."""
    B, D = x.shape
    assert w1.shape == (D, H1)
    assert w2.shape == (H1, H2)

    # No-ops if the caller already prepared bf16 weights / f32 biases.
    w1_b = w1.astype(jnp.bfloat16)
    w2_b = w2.astype(jnp.bfloat16)
    b1_f = b1.astype(jnp.float32).reshape(1, H1)
    b2_f = b2.astype(jnp.float32).reshape(1, H2)

    tb_eff = _choose_tile(B, tb)
    grid = (pl.cdiv(B, tb_eff),)

    flops = 2 * B * (D * H1 + H1 * H2)
    bytes_accessed = (x.size * x.dtype.itemsize
                      + w1_b.size * 2 + w2_b.size * 2
                      + b1_f.size * 4 + b2_f.size * 4
                      + B * H2 * jnp.dtype(out_dtype).itemsize)

    return pl.pallas_call(
        encoder_kernel,
        out_shape=jax.ShapeDtypeStruct((B, H2), out_dtype),
        grid_spec=pltpu.PrefetchScalarGridSpec(
            num_scalar_prefetch=0,
            grid=grid,
            in_specs=[
                pl.BlockSpec((tb_eff, D), lambda i: (i, 0)),   # x tile (f32)
                pl.BlockSpec((D, H1), lambda i: (0, 0)),       # W1 (resident, bf16)
                pl.BlockSpec((1, H1), lambda i: (0, 0)),       # b1 (f32)
                pl.BlockSpec((H1, H2), lambda i: (0, 0)),      # W2 (resident, bf16)
                pl.BlockSpec((1, H2), lambda i: (0, 0)),       # b2 (f32)
            ],
            out_specs=pl.BlockSpec((tb_eff, H2), lambda i: (i, 0)),
        ),
        compiler_params=pltpu.CompilerParams(
            dimension_semantics=("parallel",)),
        cost_estimate=pl.CostEstimate(
            flops=flops, transcendentals=0, bytes_accessed=bytes_accessed),
    )(x, w1_b, b1_f, w2_b, b2_f)


def init_params(key, state_dim):
    # Deterministic synthetic init (the module uses default nn.Linear init; we only
    # need deterministic values of the right shapes). f32 master copies.
    k1, k2, k3, k4 = jax.random.split(key, 4)
    w1 = jax.random.normal(k1, (state_dim, H1), jnp.float32) * (1.0 / jnp.sqrt(state_dim))
    b1 = jax.random.normal(k2, (1, H1), jnp.float32) * 0.01
    w2 = jax.random.normal(k3, (H1, H2), jnp.float32) * (1.0 / jnp.sqrt(H1))
    b2 = jax.random.normal(k4, (1, H2), jnp.float32) * 0.01
    return w1, b1, w2, b2


def prepare_params(w1, b1, w2, b2):
    # One-time cast of the weights to bf16 (kernel operand dtype); biases stay f32.
    return (w1.astype(jnp.bfloat16), b1.astype(jnp.float32),
            w2.astype(jnp.bfloat16), b2.astype(jnp.float32))


def reference_forward_bf16(x, w1, b1, w2, b2):
    # Matches the kernel's numerics: bf16 matmul operands, f32 accumulation/elementwise.
    h = jnp.dot(x.astype(jnp.bfloat16), w1.astype(jnp.bfloat16),
                preferred_element_type=jnp.float32)
    h = jnp.maximum(h + b1, 0.0)
    y = jnp.dot(h.astype(jnp.bfloat16), w2.astype(jnp.bfloat16),
                preferred_element_type=jnp.float32)
    return jnp.maximum(y + b2, 0.0)


if __name__ == "__main__":
    key = jax.random.PRNGKey(0)
    kx, kx2, kx3, kp = jax.random.split(key, 4)
    w1f, b1f, w2f, b2f = init_params(kp, STATE_DIM)
    w1, b1, w2, b2 = prepare_params(w1f, b1f, w2f, b2f)   # cast once, reuse

    # 1) Small batch: single block, grid=(1,), bf16 output (default).
    B = 8
    x = jax.random.normal(kx, (B, STATE_DIM), jnp.float32)
    out = jax.block_until_ready(hybrid_actor_forward(x, w1, b1, w2, b2))
    assert out.shape == (B, H2) and out.dtype == jnp.bfloat16
    ref = reference_forward_bf16(x, w1f, b1f, w2f, b2f)
    assert jnp.allclose(out.astype(jnp.float32), ref, atol=2e-2, rtol=2e-2)

    # 2) Ragged multi-block path: B=200, tile=64 -> grid=(4,), last block partially
    #    masked on write (no wrapper padding / slicing). f32 output to show out_dtype.
    B2 = 200
    x2 = jax.random.normal(kx2, (B2, STATE_DIM), jnp.float32)
    out2 = jax.block_until_ready(
        hybrid_actor_forward(x2, w1, b1, w2, b2, tb=64, out_dtype=jnp.float32))
    assert out2.shape == (B2, H2) and out2.dtype == jnp.float32
    ref2 = reference_forward_bf16(x2, w1f, b1f, w2f, b2f)
    assert jnp.allclose(out2, ref2, atol=1e-2, rtol=1e-2)

    # 3) Mid-size batch (>256): tile = round_up(cdiv(B,2),8) -> grid=(2,) so both
    #    v7x TensorCores get work; second block is ragged and write-masked.
    B3 = 300
    x3 = jax.random.normal(kx3, (B3, STATE_DIM), jnp.float32)
    out3 = jax.block_until_ready(hybrid_actor_forward(x3, w1, b1, w2, b2))
    assert out3.shape == (B3, H2) and out3.dtype == jnp.bfloat16
    ref3 = reference_forward_bf16(x3, w1f, b1f, w2f, b2f)
    assert jnp.allclose(out3.astype(jnp.float32), ref3, atol=2e-2, rtol=2e-2)

    # TODO(synk): get_discrete_dist / get_continuous_dist heads (Categorical/Normal
    # distribution objects, softmax/tanh/softplus glue) are sampling-layer code outside
    # forward(); only the encoder hot path is implemented as a Pallas kernel.
    print("KERNEL_OK")
</pallas_src>

<mosaic_0001>
module attributes {stable_mosaic.version = 11 : i64} {
  func.func @encoder_kernel(%arg0: i32, %arg1: memref<8x32xf32, #tpu.memory_space<vmem>>, %arg2: memref<32x256xbf16, #tpu.memory_space<vmem>>, %arg3: memref<1x256xf32, #tpu.memory_space<vmem>>, %arg4: memref<256x128xbf16, #tpu.memory_space<vmem>>, %arg5: memref<1x128xf32, #tpu.memory_space<vmem>>, %arg6: memref<8x128xbf16, #tpu.memory_space<vmem>>) attributes {dimension_semantics = [#tpu.dimension_semantics<parallel>], iteration_bounds = array<i64: 1>, scalar_prefetch = 0 : i64, scratch_operands = 0 : i64, tpu.core_type = #tpu.core_type<tc>, window_params = [{transform_indices = @transform_0, window_bounds = array<i64: 8, 32>}, {pipeline_mode = #tpu.pipeline_mode<synchronous>, transform_indices = @transform_1, window_bounds = array<i64: 32, 256>}, {pipeline_mode = #tpu.pipeline_mode<synchronous>, transform_indices = @transform_2, window_bounds = array<i64: 1, 256>}, {pipeline_mode = #tpu.pipeline_mode<synchronous>, transform_indices = @transform_3, window_bounds = array<i64: 256, 128>}, {pipeline_mode = #tpu.pipeline_mode<synchronous>, transform_indices = @transform_4, window_bounds = array<i64: 1, 128>}, {transform_indices = @transform_5, window_bounds = array<i64: 8, 128>}]} {
    %c0 = arith.constant 0 : index
    %c0_0 = arith.constant 0 : index
    %0 = vector.load %arg1[%c0, %c0_0] : memref<8x32xf32, #tpu.memory_space<vmem>>, vector<8x32xf32>
    %1 = arith.truncf %0 : vector<8x32xf32> to vector<8x32xbf16>
    %c0_1 = arith.constant 0 : index
    %c0_2 = arith.constant 0 : index
    %2 = vector.load %arg2[%c0_1, %c0_2] : memref<32x256xbf16, #tpu.memory_space<vmem>>, vector<32x256xbf16>
    %cst = arith.constant dense<0.000000e+00> : vector<8x256xf32>
    %3 = tpu.matmul %1, %2, %cst {dimension_numbers = #tpu.dot_dimension_numbers<[1], [0], [0], [1], [0, 0, 1, 1], [], []>} : vector<8x32xbf16>, vector<32x256xbf16>, vector<8x256xf32> -> vector<8x256xf32>
    %c0_3 = arith.constant 0 : index
    %c0_4 = arith.constant 0 : index
    %4 = vector.load %arg3[%c0_3, %c0_4] : memref<1x256xf32, #tpu.memory_space<vmem>>, vector<1x256xf32>
    %5 = vector.broadcast %4 : vector<1x256xf32> to vector<8x256xf32>
    %6 = arith.addf %3, %5 : vector<8x256xf32>
    %cst_5 = arith.constant 0.000000e+00 : f32
    %7 = vector.broadcast %cst_5 : f32 to vector<8x256xf32>
    %8 = arith.maximumf %6, %7 : vector<8x256xf32>
    %9 = arith.truncf %8 : vector<8x256xf32> to vector<8x256xbf16>
    %c0_6 = arith.constant 0 : index
    %c0_7 = arith.constant 0 : index
    %10 = vector.load %arg4[%c0_6, %c0_7] : memref<256x128xbf16, #tpu.memory_space<vmem>>, vector<256x128xbf16>
    %cst_8 = arith.constant dense<0.000000e+00> : vector<8x128xf32>
    %11 = tpu.matmul %9, %10, %cst_8 {dimension_numbers = #tpu.dot_dimension_numbers<[1], [0], [0], [1], [0, 0, 1, 1], [], []>} : vector<8x256xbf16>, vector<256x128xbf16>, vector<8x128xf32> -> vector<8x128xf32>
    %c0_9 = arith.constant 0 : index
    %c0_10 = arith.constant 0 : index
    %12 = vector.load %arg5[%c0_9, %c0_10] : memref<1x128xf32, #tpu.memory_space<vmem>>, vector<1x128xf32>
    %13 = vector.broadcast %12 : vector<1x128xf32> to vector<8x128xf32>
    %14 = arith.addf %11, %13 : vector<8x128xf32>
    %cst_11 = arith.constant 0.000000e+00 : f32
    %15 = vector.broadcast %cst_11 : f32 to vector<8x128xf32>
    %16 = arith.maximumf %14, %15 : vector<8x128xf32>
    %17 = arith.truncf %16 : vector<8x128xf32> to vector<8x128xbf16>
    %c0_12 = arith.constant 0 : index
    %c0_13 = arith.constant 0 : index
    %18 = vector.load %arg6[%c0_12, %c0_13] : memref<8x128xbf16, #tpu.memory_space<vmem>>, vector<8x128xbf16>
    tpu.vector_store %arg6[%c0_12, %c0_13], %17 {strides = array<i32>} : memref<8x128xbf16, #tpu.memory_space<vmem>>, vector<8x128xbf16>,
    return
  }
  func.func @transform_0(%arg0: i32) -> (i32, i32) {
    %c0_i32 = arith.constant 0 : i32
    %c0_i32_0 = arith.constant 0 : i32
    return %arg0, %c0_i32 : i32, i32
  }
  func.func @transform_1(%arg0: i32) -> (i32, i32) {
    %c0_i32 = arith.constant 0 : i32
    %c0_i32_0 = arith.constant 0 : i32
    %c0_i32_1 = arith.constant 0 : i32
    return %c0_i32, %c0_i32_0 : i32, i32
  }
  func.func @transform_2(%arg0: i32) -> (i32, i32) {
    %c0_i32 = arith.constant 0 : i32
    %c0_i32_0 = arith.constant 0 : i32
    %c0_i32_1 = arith.constant 0 : i32
    return %c0_i32, %c0_i32_0 : i32, i32
  }
  func.func @transform_3(%arg0: i32) -> (i32, i32) {
    %c0_i32 = arith.constant 0 : i32
    %c0_i32_0 = arith.constant 0 : i32
    %c0_i32_1 = arith.constant 0 : i32
    return %c0_i32, %c0_i32_0 : i32, i32
  }
  func.func @transform_4(%arg0: i32) -> (i32, i32) {
    %c0_i32 = arith.constant 0 : i32
    %c0_i32_0 = arith.constant 0 : i32
    %c0_i32_1 = arith.constant 0 : i32
    return %c0_i32, %c0_i32_0 : i32, i32
  }
  func.func @transform_5(%arg0: i32) -> (i32, i32) {
    %c0_i32 = arith.constant 0 : i32
    %c0_i32_0 = arith.constant 0 : i32
    return %arg0, %c0_i32 : i32, i32
  }
}

</mosaic_0001>

<bundles_post_ra>
// kernel: tpu_custom_call.1
= control target key start
LH: loop header
LB: loop body
LE: loop exit
PB: predicated region body
PF: predicated region fallthrough
CT: control target
= control target key end

     0   :  { %10 = vsyncpa [#allocation3], 0  ;;  %s604_s0 = inlined_call_operand.hbm [shape: f32[8,32], index: 0, kind: input, shape index: {}]   ;;  %s605_s1 = inlined_call_operand.hbm [shape: bf16[32,256], index: 1, kind: input, shape index: {}]   ;;  %s606_s2 = inlined_call_operand.vmem [shape: f32[1,256], index: 2, kind: input, shape index: {}]   ;;  %s607_s3 = inlined_call_operand.hbm [shape: bf16[256,128], index: 3, kind: input, shape index: {}]   ;;  %s608_s4 = inlined_call_operand.vmem [shape: f32[1,128], index: 4, kind: input, shape index: {}]   ;;  %s609_s5 = inlined_call_operand.hbm [shape: bf16[8,128], index: 5, kind: output, shape index: {}]  }
   0x1   :  { %11 = vsyncpa [#allocation6], 0 }
   0x2   :  { %12 = vsyncpa [#allocation4], 0  ;;  %s511_s18 = smov [#allocation5]   ;;  %s417_s22 = scalar_lea.hbm %s605_s1, 512 }
   0x3   :  { %s28_s19 = sshll.u32 %s511_s18, 4  ;;  %p418_p0 = scmp.ne.s32.totalorder %s605_s1, %s417_s22  ;;  %s29_s19 = int_to_ptr.vmem [resolvable:$true] %s28_s19 }
   0x4   :  { %p421_p1 = scmp.lt.u32.totalorder %s417_s22, %s605_s1 }
   0x6   :  { %p423_p2 = pnand %p421_p1, %p418_p0 }
   0x8   :  { %426 = shalt.err (!%p423_p2)
}
   0x9   :  { %s427_s27 = scalar_lea.vmem %s29_s19, 512  ;;  %p432_p4 = scmp.lt.s32.totalorder %s29_s19, %s29_s19 }
   0xa   :  { %p428_p3 = scmp.ne.s32.totalorder %s29_s19, %s427_s27  ;;  %p433_p5 = scmp.lt.s32.totalorder %s427_s27, %s427_s27 }
   0xc   :  { %p434_p6 = por %p433_p5, %p432_p4 }
   0xe   :  { %p435_p7 = pnand %p434_p6, %p428_p3 }
  0x10   :  { %438 = shalt.err (!%p435_p7)
}
  0x11   :  { %s512_s28 = smov 128   ;;  %s513_s29 = smov 8  }
  0x12   :  { %34 = dma.hbm_to_vmem [thread:$0]  %s605_s1, 512, %s29_s19, [#allocation6], %s512_s28, %s512_s28, %s513_s29  }
  0x13   :  { %s514_s7 = smov [#allocation2]   ;;  %s515_s9 = smov [#allocation7]  }
  0x14   :  { %s19_s8 = sshll.u32 %s514_s7, 4  ;;  %s42_s10 = sshll.u32 %s515_s9, 4  ;;  %s20_s8 = int_to_ptr.vmem [resolvable:$true] %s19_s8  ;;  %s43_s10 = int_to_ptr.vmem [resolvable:$true] %s42_s10 }
  0x15   :  { %s439_s13 = scalar_lea.hbm %s604_s0, 128 }
  0x16   :  { %p440_p8 = scmp.ne.s32.totalorder %s604_s0, %s439_s13  ;;  %p443_p9 = scmp.lt.u32.totalorder %s439_s13, %s604_s0 }
  0x18   :  { %p445_p10 = pnand %p443_p9, %p440_p8 }
  0x1a   :  { %448 = shalt.err (!%p445_p10)
}
  0x1b   :  { %s449_s1 = scalar_lea.vmem %s20_s8, 128  ;;  %p454_p12 = scmp.lt.s32.totalorder %s20_s8, %s20_s8 }
  0x1c   :  { %p450_p11 = scmp.ne.s32.totalorder %s20_s8, %s449_s1  ;;  %p455_p13 = scmp.lt.s32.totalorder %s449_s1, %s449_s1 }
  0x1e   :  { %p456_p0 = por %p455_p13, %p454_p12 }
  0x20   :  { %p457_p1 = pnand %p456_p0, %p450_p11 }
  0x22   :  { %460 = shalt.err (!%p457_p1)
}
  0x23   :  { %22 = dma.hbm_to_vmem [thread:$0]  %s604_s0, 128, %s20_s8, [#allocation3]  }
  0x24   :  { %s461_s22 = scalar_lea.hbm %s607_s3, 2048 }
  0x25   :  { %p462_p2 = scmp.ne.s32.totalorder %s607_s3, %s461_s22  ;;  %p465_p3 = scmp.lt.u32.totalorder %s461_s22, %s607_s3 }
  0x27   :  { %p467_p4 = pnand %p465_p3, %p462_p2 }
  0x29   :  { %470 = shalt.err (!%p467_p4)
}
  0x2a   :  { %s471_s27 = scalar_lea.vmem %s43_s10, 2048  ;;  %p476_p6 = scmp.lt.s32.totalorder %s43_s10, %s43_s10 }
  0x2b   :  { %p472_p5 = scmp.ne.s32.totalorder %s43_s10, %s471_s27  ;;  %p477_p7 = scmp.lt.s32.totalorder %s471_s27, %s471_s27 }
  0x2d   :  { %p478_p8 = por %p477_p7, %p476_p6 }
  0x2f   :  { %p479_p9 = pnand %p478_p8, %p472_p5 }
  0x31   :  { %482 = shalt.err (!%p479_p9)
}
  0x32   :  { %s516_s0 = smov 64   ;;  %s517_s28 = smov 4  }
  0x33   :  { %48 = dma.hbm_to_vmem [thread:$0]  %s607_s3, 2048, %s43_s10, [#allocation6], %s516_s0, %s516_s0, %s517_s28  }
  0x34   :  { %505 = dma.done.wait [#allocation3], 128  }
  0x35   :  { %506 = vsyncadd [#allocation3], 4294967168 }
  0x36   :  { %507 = dma.done.wait [#allocation6], 2560  }
  0x37   :  { %508 = vsyncadd [#allocation6], 4294964736  ;;  %v518_v0 = vmov 0   ;;  %v395_v1 = vld [vmem:[#allocation5 + $0x4] ss:$8 sps:$4 sm:$0xff]   ;;  %v61_v5 = vld [vmem:[#allocation2] sm:$0xff]  ;;  %v69_v23 = vlaneseq }
  0x38   :  { %135 = vmatprep.mubr.bf16.mxu0 %v518_v0  ;;  %v397_v2 = vld [vmem:[#allocation5] ss:$8 sps:$4 sm:$0xff]   ;;  %103 = vmatprep.subr.bf16.mxu0 %v395_v1  ;;  %v398_v3 = vld [vmem:[#allocation5 + $0x14] ss:$8 sps:$4 sm:$0xff]   ;;  %v400_v4 = vld [vmem:[#allocation5 + $0x10] ss:$8 sps:$4 sm:$0xff]   ;;  %v62_v9 = vpack.c.bf16 %v61_v5, %v61_v5 }
  0x39   :  { %104 = vmatpush1.bf16.msra.mxu0 %v397_v2  ;;  %v401_v6 = vld [vmem:[#allocation7 + $0x40] sm:$0xff]   ;;  %v403_v8 = vld [vmem:[#allocation7 + $0x48] sm:$0xff]   ;;  %vm99_vm0 = vcmask 261120   ;;  %v405_v11 = vld [vmem:[#allocation7 + $0x50] sm:$0xff]   ;;  %v70_v24 = vshrl.u32 %v69_v23, 7 }
  0x3a   :  { %105 = vmatprep.subr.bf16.mxu0 %v398_v3  ;;  %v402_v7 = vld [vmem:[#allocation7] sm:$0xff]   ;;  %364 = vmatprep.subr.bf16.mxu1 %v401_v6  ;;  %v404_v10 = vld [vmem:[#allocation7 + $0x8] sm:$0xff]   ;;  %v406_v12 = vld [vmem:[#allocation7 + $0x10] sm:$0xff]  }
  0x3b   :  { %365 = vmatpush3.bf16.msra.mxu1 %v402_v7  ;;  %v407_v13 = vld [vmem:[#allocation7 + $0x58] sm:$0xff]   ;;  %v409_v15 = vld [vmem:[#allocation7 + $0x60] sm:$0xff]   ;;  %v411_v17 = vld [vmem:[#allocation7 + $0x68] sm:$0xff]   ;;  %v71_v25 = vsub.s32 0, %v70_v24  ;;  %v75_v27 = vsub.s32 1, %v70_v24 }
  0x3c   :  { %366 = vmatprep.subr.bf16.mxu1 %v403_v8  ;;  %v408_v14 = vld [vmem:[#allocation7 + $0x18] sm:$0xff]   ;;  %v410_v16 = vld [vmem:[#allocation7 + $0x20] sm:$0xff]   ;;  %v412_v18 = vld [vmem:[#allocation7 + $0x28] sm:$0xff]  }
  0x3d   :  { %106 = vmatpush1.bf16.msra.mxu0 %v400_v4  ;;  %v413_v19 = vld [vmem:[#allocation7 + $0x70] sm:$0xff]   ;;  %v415_v21 = vld [vmem:[#allocation7 + $0x78] sm:$0xff]  }
  0x3e   :  { %v414_v20 = vld [vmem:[#allocation7 + $0x30] sm:$0xff]   ;;  %v416_v22 = vld [vmem:[#allocation7 + $0x38] sm:$0xff]  }
  0x3f   :  { %367 = vmatpush3.bf16.msra.mxu1 %v404_v10  ;;  %v67_v26 = vld [vmem:[%s606_s2] sm:$0x3]  ;;  %s519_s2 = smov [#allocation8]  }
  0x40   :  { %346 = vmatmul.mubr.msk.bf16.vlgmr.msra.gmra.mrb[0].mxu0 %vm99_vm0, %v62_v9  ;;  %368 = vmatprep.subr.bf16.mxu1 %v405_v11  ;;  %v72_v28 = vrot.slane %v67_v26, %v71_v25  ;;  %v76_v29 = vrot.slane %v67_v26, %v75_v27  ;;  %v347_v41 = vld [vmem:[%s608_s4] ss:$0 sm:$0xff]  ;;  %s332_s9 = sshll.u32 %s519_s2, 4  ;;  %s333_s9 = int_to_ptr.vmem [resolvable:$true] %s332_s9 }
  0x41   :  { %s483_s10 = scalar_lea.vmem %s333_s9, 64  ;;  %p488_p11 = scmp.lt.s32.totalorder %s333_s9, %s333_s9 }
  0x42   :  { %p484_p10 = scmp.ne.s32.totalorder %s333_s9, %s483_s10  ;;  %p489_p12 = scmp.lt.s32.totalorder %s483_s10, %s483_s10 }
  0x43   :  { %369 = vmatpush3.bf16.msra.mxu1 %v406_v12 }
  0x44   :  { %370 = vmatprep.subr.bf16.mxu1 %v407_v13  ;;  %p490_p13 = por %p489_p12, %p488_p11 }
  0x46   :  { %p491_p0 = pnand %p490_p13, %p484_p10 }
  0x47   :  { %371 = vmatpush3.bf16.msra.mxu1 %v408_v14 }
  0x48   :  { %372 = vmatprep.subr.bf16.mxu1 %v409_v15 }
  0x4b   :  { %373 = vmatpush3.bf16.msra.mxu1 %v410_v16 }
  0x4c   :  { %374 = vmatprep.subr.bf16.mxu1 %v411_v17 }
  0x4f   :  { %375 = vmatpush3.bf16.msra.mxu1 %v412_v18 }
  0x50   :  { %376 = vmatprep.subr.bf16.mxu1 %v413_v19 }
  0x53   :  { %377 = vmatpush3.bf16.msra.mxu1 %v414_v20 }
  0x54   :  { %378 = vmatprep.subr.bf16.mxu1 %v415_v21 }
  0x57   :  { %379 = vmatpush3.bf16.msra.mxu1 %v416_v22 }
 0x113   :  { %v137_v30 = vpop.f32.mrb[0].mxu0 }
 0x114   :  { %v138_v31 = vadd.f32 %v137_v30, %v72_v28  ;;  %v139_v32 = vpop.f32.mrb[1].mxu0 }
 0x115   :  { %v140_v33 = vadd.f32 %v139_v32, %v76_v29  ;;  %v141_v34 = vpop.f32.mrb[2].mxu0 }
 0x116   :  { %v144_v35 = vmax.f32 %v138_v31, 0.0  ;;  %v142_v36 = vpop.f32.mrb[3].mxu0 }
 0x117   :  { %v145_v37 = vmax.f32 %v140_v33, 0.0 }
 0x118   :  { %v146_v39 = vpack.c.bf16 %v144_v35, %v144_v35 }
 0x119   :  { %v147_v38 = vpack.c.bf16 %v145_v37, %v145_v37 }
 0x11b   :  { %315 = vmatprep.mubr.bf16.mxu1 %v147_v38 }
 0x11c   :  { %316 = vmatmul.mubr.bf16.vlgmr.msra.gmra.mrb[0].mxu1 %v146_v39 }
 0x1ef   :  { %v380_v40 = vpop.f32.mrb[0].mxu1 }
 0x1f0   :  { %v381_v42 = vpop.f32.mrb[1].mxu1 }
 0x1f1   :  { %v382_v43 = vadd.f32 %v381_v42, %v380_v40  ;;  %v383_v44 = vpop.f32.mrb[2].mxu1 }
 0x1f2   :  { %v384_v45 = vpop.f32.mrb[3].mxu1 }
 0x1f3   :  { %v318_v46 = vadd.f32 %v382_v43, %v347_v41 }
 0x1f5   :  { %v323_v47 = vmax.f32 %v318_v46, 0.0 }
 0x1f7   :  { %v324_v48 = vpack.c.bf16 %v323_v47, %v323_v47 }
 0x1f9   :  { %325 = vst [vmem:[#allocation8] sm:$0xf] %v324_v48 }
 0x1fa   :  { %494 = shalt.err (!%p491_p0)
}
 0x1fb   :  { %s495_s12 = scalar_lea.hbm %s609_s5, 64 }
 0x1fc   :  { %p496_p1 = scmp.ne.s32.totalorder %s609_s5, %s495_s12  ;;  %p499_p2 = scmp.lt.u32.totalorder %s495_s12, %s609_s5 }
 0x1fe   :  { %p501_p3 = pnand %p499_p2, %p496_p1 }
 0x200   :  { %504 = shalt.err (!%p501_p3)
}
 0x201   :  { %335 = dma.vmem_to_hbm [thread:$0]  %s333_s9, 64, %s609_s5, [#allocation4]  }
 0x202   :  { %509 = dma.done.wait [#allocation4], 64  }
 0x203   :  { %510 = vsyncadd [#allocation4], 4294967232 }
 0x204   :  { %339 = vsyncpa [#allocation3], 1 }
 0x205   :  { %340 = vsyncpa [#allocation6], 1 }
 0x206   :  { %341 = vsyncpa [#allocation4], 1 }

</bundles_post_ra>
